<compile_context>
chip_gen: v5e
topology: v5e:2x2
jax: 0.10.0
libtpu: 0.0.40
codegen_flags: <defaults>
</compile_context>

<pallas_src>
import functools

import jax
import jax.numpy as jnp
from jax.experimental import pallas as pl
from jax.experimental.pallas import tpu as pltpu


def _round_up(x, m):
    return ((x + m - 1) // m) * m


def _ranking_loss_kernel(cs_ref, adj_ref, out_ref,
                         acc_pos_ref, acc_cnt_pos_ref, acc_neg_ref, acc_cnt_neg_ref,
                         *, margin, rows, row_tile, lanes, steps_per_group,
                         num_tiles, need_mask):
    """Per grid step: masked elementwise contributions folded into small
    (8, lanes) VMEM accumulators; scalar collapse + output write happen once
    per group at the last step."""
    g = pl.program_id(0)
    s = pl.program_id(1)

    @pl.when(s == 0)
    def _init():
        acc_pos_ref[...] = jnp.zeros_like(acc_pos_ref)
        acc_cnt_pos_ref[...] = jnp.zeros_like(acc_cnt_pos_ref)
        acc_neg_ref[...] = jnp.zeros_like(acc_neg_ref)
        acc_cnt_neg_ref[...] = jnp.zeros_like(acc_cnt_neg_ref)

    cs = cs_ref[...].astype(jnp.float32)   # cast in-kernel; HBM stays native dtype
    adj = adj_ref[...]                     # compare in native dtype (no upcast)

    def fold(x):
        # Fold (row_tile, lanes) -> (8, lanes) along the sublane-tile axis.
        # The reshape groups whole 8-row sublane tiles (no (8,128)-boundary
        # crossing); the axis-0 sum lowers to vreg-wise VALU adds, so the only
        # vector stores per step are 4 small accumulator updates.
        if row_tile % 8 == 0 and row_tile > 8:
            return x.reshape(row_tile // 8, 8, lanes).sum(axis=0)
        return x

    def accumulate(pos, neg):
        # Select-based masking (NOT mask-multiply) so garbage/NaN in padded
        # rows can never poison the sums.
        acc_pos_ref[...] += fold(jnp.where(pos, 1.0 - cs, 0.0))
        acc_cnt_pos_ref[...] += fold(pos.astype(jnp.float32))
        acc_neg_ref[...] += fold(jnp.where(neg, jnp.maximum(cs - margin, 0.0), 0.0))
        acc_cnt_neg_ref[...] += fold(neg.astype(jnp.float32))

    def contribute(valid):
        pos = adj > 0
        neg = adj == 0
        if valid is not None:
            pos = jnp.logical_and(pos, valid)
            neg = jnp.logical_and(neg, valid)
        accumulate(pos, neg)

    if need_mask:
        # Only the ragged-tail tile (t == num_tiles - 1) and clamped overrun
        # tiles (t >= num_tiles) pay the iota mask; every other tile runs the
        # unmasked fast path.
        t = g * steps_per_group + s

        @pl.when(t < num_tiles - 1)
        def _fast():
            contribute(None)

        @pl.when(t >= num_tiles - 1)
        def _edge():
            row0 = t * row_tile
            local_row = jax.lax.broadcasted_iota(jnp.int32, (row_tile, lanes), 0)
            valid = (row0 + local_row) < rows
            contribute(valid)
    else:
        contribute(None)

    @pl.when(s == pl.num_programs(1) - 1)
    def _finalize():
        out_ref[0, 0, :, :] = jnp.full((8, 128), jnp.sum(acc_pos_ref[...]), jnp.float32)
        out_ref[0, 1, :, :] = jnp.full((8, 128), jnp.sum(acc_cnt_pos_ref[...]), jnp.float32)
        out_ref[0, 2, :, :] = jnp.full((8, 128), jnp.sum(acc_neg_ref[...]), jnp.float32)
        out_ref[0, 3, :, :] = jnp.full((8, 128), jnp.sum(acc_cnt_neg_ref[...]), jnp.float32)


def ranking_contrastive_loss(cosine_similarity, adjacency_matrix, margin=0.2,
                             target_tile_elems=1 << 20, num_groups=1):
    """total_loss = mean(1 - cs[adj>0]) + mean(relu(cs[adj==0] - margin)).

    Caller contract:
      * adjacency_matrix may (and should) be kept in its narrowest storage
        dtype (bool / int8 / bf16 / f32); the kernel streams it as-is and
        compares in native dtype. Do NOT upcast at the call site.
      * num_groups=1 for single-TensorCore chips (v5e/v6e); num_groups=2 may
        be used on v7x to split row tiles across both TensorCores.
      * Empty positive or negative selections yield inf/nan, matching the
        PyTorch reference (mean over an empty selection).
    """
    assert cosine_similarity.shape == adjacency_matrix.shape
    total = int(cosine_similarity.size)

    # Lane-dense layout: largest 128-multiple lane width that divides the
    # element count. The reduction is global and order-free, so any contiguous
    # reshape is valid and copy-free.
    lanes = None
    for cand in (1024, 512, 256, 128):
        if total % cand == 0:
            lanes = cand
            break
    if lanes is None:
        # TODO(synk): also tile the lane dim if a non-128-divisible last dim
        # is ever very large (this fallback is lane-sparse but correct).
        lanes = int(cosine_similarity.shape[-1])
    rows = total // lanes

    cs = cosine_similarity.reshape(rows, lanes)      # native dtype, no copy
    adj = adjacency_matrix.reshape(rows, lanes)      # native dtype, no copy

    # Row-tile selection: prefer a multiple of 8 that divides rows exactly so
    # the steady state never needs the ragged-row mask.
    target_rows = max(1, target_tile_elems // lanes)
    if rows <= target_rows:
        row_tile = rows                               # single full-extent tile
    else:
        row_tile = None
        cand = (target_rows // 8) * 8
        while cand >= 8:
            if rows % cand == 0:
                row_tile = cand
                break
            cand -= 8
        if row_tile is None:                          # no exact divisor -> ragged tail
            row_tile = max(8, _round_up(min(rows, target_rows), 8))

    num_tiles = pl.cdiv(rows, row_tile)
    groups = max(1, min(int(num_groups), num_tiles))
    steps = pl.cdiv(num_tiles, groups)
    need_mask = (rows % row_tile != 0) or (groups * steps != num_tiles)

    acc_rows = 8 if (row_tile % 8 == 0) else row_tile

    def in_index(gi, si):
        # Clamp so overrun steps (when num_tiles % groups != 0) re-read an
        # in-bounds tile; their contribution is zeroed by the edge mask.
        return (jnp.minimum(gi * steps + si, num_tiles - 1), 0)

    # Explicit VMEM budget: 2 inputs x 2 pipeline buffers x block (native
    # dtype) + 4 small accumulators + output blocks + headroom. Capped under
    # v7x's 64 MiB physical VMEM; raises v5e's 16 MiB default scoped limit.
    in_block_bytes = row_tile * lanes * (cs.dtype.itemsize + adj.dtype.itemsize)
    acc_bytes = 4 * acc_rows * lanes * 4
    need_bytes = 2 * in_block_bytes + acc_bytes + 2 * (4 * 8 * 128 * 4) + (2 << 20)
    vmem_limit = int(min(48 << 20, max(need_bytes, 24 << 20)))

    out = pl.pallas_call(
        functools.partial(
            _ranking_loss_kernel, margin=float(margin), rows=rows,
            row_tile=row_tile, lanes=lanes, steps_per_group=steps,
            num_tiles=num_tiles, need_mask=need_mask),
        out_shape=jax.ShapeDtypeStruct((groups, 4, 8, 128), jnp.float32),
        grid_spec=pltpu.PrefetchScalarGridSpec(
            num_scalar_prefetch=0,
            grid=(groups, steps),
            in_specs=[
                pl.BlockSpec((row_tile, lanes), in_index),
                pl.BlockSpec((row_tile, lanes), in_index),
            ],
            out_specs=pl.BlockSpec((1, 4, 8, 128), lambda gi, si: (gi, 0, 0, 0)),
            scratch_shapes=[pltpu.VMEM((acc_rows, lanes), jnp.float32)] * 4,
        ),
        compiler_params=pltpu.CompilerParams(
            dimension_semantics=("parallel", "arbitrary"),
            vmem_limit_bytes=vmem_limit),
    )(cs, adj)

    # Combine per-group partial sums/counts and take the two means in JAX.
    stats = jnp.sum(out[:, :, 0, 0], axis=0)         # (4,) f32
    pos_loss = stats[0] / stats[1]
    neg_loss = stats[2] / stats[3]
    return pos_loss + neg_loss


def _reference_loss(cs, adj, margin=0.2):
    cs = cs.reshape(-1).astype(jnp.float32)
    adj = adj.reshape(-1).astype(jnp.float32)
    pos = adj > 0
    neg = adj == 0
    pos_loss = jnp.sum(jnp.where(pos, 1.0 - cs, 0.0)) / jnp.sum(pos)
    neg_loss = jnp.sum(jnp.where(neg, jnp.maximum(cs - margin, 0.0), 0.0)) / jnp.sum(neg)
    return pos_loss + neg_loss


if __name__ == "__main__":
    key = jax.random.PRNGKey(0)
    k1, k2 = jax.random.split(key)

    # Small shapes: batch of 2 similarity "maps" of 16x16 nodes.
    B, N = 2, 16
    cosine_similarity = jax.random.uniform(k1, (B, N, N), jnp.float32,
                                           minval=-1.0, maxval=1.0)
    adjacency_matrix = (jax.random.uniform(k2, (B, N, N)) > 0.5).astype(jnp.float32)

    loss = ranking_contrastive_loss(cosine_similarity, adjacency_matrix, margin=0.2)
    loss = jax.block_until_ready(loss)

    ref = _reference_loss(cosine_similarity, adjacency_matrix, margin=0.2)
    assert jnp.allclose(loss, ref, rtol=1e-5, atol=1e-5), (loss, ref)

    print("KERNEL_OK")
</pallas_src>

<mosaic_0001>
module attributes {stable_mosaic.version = 11 : i64} {
  func.func @_ranking_loss_kernel(%arg0: i32, %arg1: i32, %arg2: memref<1x512xf32, #tpu.memory_space<vmem>>, %arg3: memref<1x512xf32, #tpu.memory_space<vmem>>, %arg4: memref<1x4x8x128xf32, #tpu.memory_space<vmem>>, %arg5: memref<1x512xf32, #tpu.memory_space<vmem>>, %arg6: memref<1x512xf32, #tpu.memory_space<vmem>>, %arg7: memref<1x512xf32, #tpu.memory_space<vmem>>, %arg8: memref<1x512xf32, #tpu.memory_space<vmem>>) attributes {dimension_semantics = [#tpu.dimension_semantics<parallel>, #tpu.dimension_semantics<arbitrary>], iteration_bounds = array<i64: 1, 1>, scalar_prefetch = 0 : i64, scratch_operands = 4 : i64, tpu.core_type = #tpu.core_type<tc>, window_params = [{transform_indices = @transform_0, window_bounds = array<i64: 1, 512>}, {transform_indices = @transform_1, window_bounds = array<i64: 1, 512>}, {transform_indices = @transform_2, window_bounds = array<i64: 1, 4, 8, 128>}]} {
    %c0_i32 = arith.constant 0 : i32
    %0 = arith.cmpi eq, %arg1, %c0_i32 : i32
    %1 = arith.extui %0 : i1 to i32
    %c0_i32_0 = arith.constant 0 : i32
    %2 = arith.cmpi ne, %1, %c0_i32_0 : i32
    scf.if %2 {
      %cst_28 = arith.constant 0.000000e+00 : f32
      %38 = vector.broadcast %cst_28 : f32 to vector<1x512xf32>
      %c0_29 = arith.constant 0 : index
      %c0_30 = arith.constant 0 : index
      %39 = vector.load %arg5[%c0_29, %c0_30] : memref<1x512xf32, #tpu.memory_space<vmem>>, vector<1x512xf32>
      tpu.vector_store %arg5[%c0_29, %c0_30], %38 {strides = array<i32>} : memref<1x512xf32, #tpu.memory_space<vmem>>, vector<1x512xf32>,
      %cst_31 = arith.constant 0.000000e+00 : f32
      %40 = vector.broadcast %cst_31 : f32 to vector<1x512xf32>
      %c0_32 = arith.constant 0 : index
      %c0_33 = arith.constant 0 : index
      %41 = vector.load %arg6[%c0_32, %c0_33] : memref<1x512xf32, #tpu.memory_space<vmem>>, vector<1x512xf32>
      tpu.vector_store %arg6[%c0_32, %c0_33], %40 {strides = array<i32>} : memref<1x512xf32, #tpu.memory_space<vmem>>, vector<1x512xf32>,
      %cst_34 = arith.constant 0.000000e+00 : f32
      %42 = vector.broadcast %cst_34 : f32 to vector<1x512xf32>
      %c0_35 = arith.constant 0 : index
      %c0_36 = arith.constant 0 : index
      %43 = vector.load %arg7[%c0_35, %c0_36] : memref<1x512xf32, #tpu.memory_space<vmem>>, vector<1x512xf32>
      tpu.vector_store %arg7[%c0_35, %c0_36], %42 {strides = array<i32>} : memref<1x512xf32, #tpu.memory_space<vmem>>, vector<1x512xf32>,
      %cst_37 = arith.constant 0.000000e+00 : f32
      %44 = vector.broadcast %cst_37 : f32 to vector<1x512xf32>
      %c0_38 = arith.constant 0 : index
      %c0_39 = arith.constant 0 : index
      %45 = vector.load %arg8[%c0_38, %c0_39] : memref<1x512xf32, #tpu.memory_space<vmem>>, vector<1x512xf32>
      tpu.vector_store %arg8[%c0_38, %c0_39], %44 {strides = array<i32>} : memref<1x512xf32, #tpu.memory_space<vmem>>, vector<1x512xf32>,
    } else {
    }
    %c0 = arith.constant 0 : index
    %c0_1 = arith.constant 0 : index
    %3 = vector.load %arg2[%c0, %c0_1] : memref<1x512xf32, #tpu.memory_space<vmem>>, vector<1x512xf32>
    %c0_2 = arith.constant 0 : index
    %c0_3 = arith.constant 0 : index
    %4 = vector.load %arg3[%c0_2, %c0_3] : memref<1x512xf32, #tpu.memory_space<vmem>>, vector<1x512xf32>
    %cst = arith.constant 0.000000e+00 : f32
    %5 = vector.broadcast %cst : f32 to vector<1x512xf32>
    %6 = arith.cmpf ogt, %4, %5 : vector<1x512xf32>
    %cst_4 = arith.constant 0.000000e+00 : f32
    %7 = vector.broadcast %cst_4 : f32 to vector<1x512xf32>
    %8 = arith.cmpf oeq, %4, %7 : vector<1x512xf32>
    %c0_5 = arith.constant 0 : index
    %c0_6 = arith.constant 0 : index
    %9 = vector.load %arg5[%c0_5, %c0_6] : memref<1x512xf32, #tpu.memory_space<vmem>>, vector<1x512xf32>
    %cst_7 = arith.constant 1.000000e+00 : f32
    %10 = vector.broadcast %cst_7 : f32 to vector<1x512xf32>
    %11 = arith.subf %10, %3 : vector<1x512xf32>
    %cst_8 = arith.constant 0.000000e+00 : f32
    %12 = vector.broadcast %cst_8 : f32 to vector<1x512xf32>
    %13 = arith.select %6, %11, %12 : vector<1x512xi1>, vector<1x512xf32>
    %14 = arith.addf %9, %13 : vector<1x512xf32>
    %c0_9 = arith.constant 0 : index
    %c0_10 = arith.constant 0 : index
    %15 = vector.load %arg5[%c0_9, %c0_10] : memref<1x512xf32, #tpu.memory_space<vmem>>, vector<1x512xf32>
    tpu.vector_store %arg5[%c0_9, %c0_10], %14 {strides = array<i32>} : memref<1x512xf32, #tpu.memory_space<vmem>>, vector<1x512xf32>,
    %c0_11 = arith.constant 0 : index
    %c0_12 = arith.constant 0 : index
    %16 = vector.load %arg6[%c0_11, %c0_12] : memref<1x512xf32, #tpu.memory_space<vmem>>, vector<1x512xf32>
    %17 = arith.extui %6 : vector<1x512xi1> to vector<1x512xi32>
    %18 = arith.sitofp %17 : vector<1x512xi32> to vector<1x512xf32>
    %19 = arith.addf %16, %18 : vector<1x512xf32>
    %c0_13 = arith.constant 0 : index
    %c0_14 = arith.constant 0 : index
    %20 = vector.load %arg6[%c0_13, %c0_14] : memref<1x512xf32, #tpu.memory_space<vmem>>, vector<1x512xf32>
    tpu.vector_store %arg6[%c0_13, %c0_14], %19 {strides = array<i32>} : memref<1x512xf32, #tpu.memory_space<vmem>>, vector<1x512xf32>,
    %c0_15 = arith.constant 0 : index
    %c0_16 = arith.constant 0 : index
    %21 = vector.load %arg7[%c0_15, %c0_16] : memref<1x512xf32, #tpu.memory_space<vmem>>, vector<1x512xf32>
    %cst_17 = arith.constant 2.000000e-01 : f32
    %22 = vector.broadcast %cst_17 : f32 to vector<1x512xf32>
    %23 = arith.subf %3, %22 : vector<1x512xf32>
    %cst_18 = arith.constant 0.000000e+00 : f32
    %24 = vector.broadcast %cst_18 : f32 to vector<1x512xf32>
    %25 = arith.maximumf %23, %24 : vector<1x512xf32>
    %cst_19 = arith.constant 0.000000e+00 : f32
    %26 = vector.broadcast %cst_19 : f32 to vector<1x512xf32>
    %27 = arith.select %8, %25, %26 : vector<1x512xi1>, vector<1x512xf32>
    %28 = arith.addf %21, %27 : vector<1x512xf32>
    %c0_20 = arith.constant 0 : index
    %c0_21 = arith.constant 0 : index
    %29 = vector.load %arg7[%c0_20, %c0_21] : memref<1x512xf32, #tpu.memory_space<vmem>>, vector<1x512xf32>
    tpu.vector_store %arg7[%c0_20, %c0_21], %28 {strides = array<i32>} : memref<1x512xf32, #tpu.memory_space<vmem>>, vector<1x512xf32>,
    %c0_22 = arith.constant 0 : index
    %c0_23 = arith.constant 0 : index
    %30 = vector.load %arg8[%c0_22, %c0_23] : memref<1x512xf32, #tpu.memory_space<vmem>>, vector<1x512xf32>
    %31 = arith.extui %8 : vector<1x512xi1> to vector<1x512xi32>
    %32 = arith.sitofp %31 : vector<1x512xi32> to vector<1x512xf32>
    %33 = arith.addf %30, %32 : vector<1x512xf32>
    %c0_24 = arith.constant 0 : index
    %c0_25 = arith.constant 0 : index
    %34 = vector.load %arg8[%c0_24, %c0_25] : memref<1x512xf32, #tpu.memory_space<vmem>>, vector<1x512xf32>
    tpu.vector_store %arg8[%c0_24, %c0_25], %33 {strides = array<i32>} : memref<1x512xf32, #tpu.memory_space<vmem>>, vector<1x512xf32>,
    %c0_i32_26 = arith.constant 0 : i32
    %35 = arith.cmpi eq, %arg1, %c0_i32_26 : i32
    %36 = arith.extui %35 : i1 to i32
    %c0_i32_27 = arith.constant 0 : i32
    %37 = arith.cmpi ne, %36, %c0_i32_27 : i32
    scf.if %37 {
      %c0_28 = arith.constant 0 : index
      %c0_29 = arith.constant 0 : index
      %38 = vector.load %arg5[%c0_28, %c0_29] : memref<1x512xf32, #tpu.memory_space<vmem>>, vector<1x512xf32>
      %39 = vector.shape_cast %38 : vector<1x512xf32> to vector<1x1x512xf32>
      %cst_30 = arith.constant dense<0.000000e+00> : vector<1xf32>
      %40 = vector.multi_reduction <add>, %39, %cst_30 [1, 2] : vector<1x1x512xf32> to vector<1xf32>
      %41 = vector.shape_cast %40 : vector<1xf32> to vector<1x1x1xf32>
      %42 = vector.extract %41[0, 0, 0] : f32 from vector<1x1x1xf32>
      %43 = vector.broadcast %42 : f32 to vector<8x128xf32>
      %c0_31 = arith.constant 0 : index
      %c0_32 = arith.constant 0 : index
      %c0_33 = arith.constant 0 : index
      %c0_34 = arith.constant 0 : index
      %44 = vector.load %arg4[%c0_31, %c0_32, %c0_33, %c0_34] : memref<1x4x8x128xf32, #tpu.memory_space<vmem>>, vector<1x1x8x128xf32>
      %45 = vector.shape_cast %44 : vector<1x1x8x128xf32> to vector<8x128xf32>
      %46 = vector.shape_cast %43 : vector<8x128xf32> to vector<1x1x8x128xf32>
      tpu.vector_store %arg4[%c0_31, %c0_32, %c0_33, %c0_34], %46 {strides = array<i32>} : memref<1x4x8x128xf32, #tpu.memory_space<vmem>>, vector<1x1x8x128xf32>,
      %c0_35 = arith.constant 0 : index
      %c0_36 = arith.constant 0 : index
      %47 = vector.load %arg6[%c0_35, %c0_36] : memref<1x512xf32, #tpu.memory_space<vmem>>, vector<1x512xf32>
      %48 = vector.shape_cast %47 : vector<1x512xf32> to vector<1x1x512xf32>
      %cst_37 = arith.constant dense<0.000000e+00> : vector<1xf32>
      %49 = vector.multi_reduction <add>, %48, %cst_37 [1, 2] : vector<1x1x512xf32> to vector<1xf32>
      %50 = vector.shape_cast %49 : vector<1xf32> to vector<1x1x1xf32>
      %51 = vector.extract %50[0, 0, 0] : f32 from vector<1x1x1xf32>
      %52 = vector.broadcast %51 : f32 to vector<8x128xf32>
      %c0_38 = arith.constant 0 : index
      %c1 = arith.constant 1 : index
      %c0_39 = arith.constant 0 : index
      %c0_40 = arith.constant 0 : index
      %53 = vector.load %arg4[%c0_38, %c1, %c0_39, %c0_40] : memref<1x4x8x128xf32, #tpu.memory_space<vmem>>, vector<1x1x8x128xf32>
      %54 = vector.shape_cast %53 : vector<1x1x8x128xf32> to vector<8x128xf32>
      %55 = vector.shape_cast %52 : vector<8x128xf32> to vector<1x1x8x128xf32>
      tpu.vector_store %arg4[%c0_38, %c1, %c0_39, %c0_40], %55 {strides = array<i32>} : memref<1x4x8x128xf32, #tpu.memory_space<vmem>>, vector<1x1x8x128xf32>,
      %c0_41 = arith.constant 0 : index
      %c0_42 = arith.constant 0 : index
      %56 = vector.load %arg7[%c0_41, %c0_42] : memref<1x512xf32, #tpu.memory_space<vmem>>, vector<1x512xf32>
      %57 = vector.shape_cast %56 : vector<1x512xf32> to vector<1x1x512xf32>
      %cst_43 = arith.constant dense<0.000000e+00> : vector<1xf32>
      %58 = vector.multi_reduction <add>, %57, %cst_43 [1, 2] : vector<1x1x512xf32> to vector<1xf32>
      %59 = vector.shape_cast %58 : vector<1xf32> to vector<1x1x1xf32>
      %60 = vector.extract %59[0, 0, 0] : f32 from vector<1x1x1xf32>
      %61 = vector.broadcast %60 : f32 to vector<8x128xf32>
      %c0_44 = arith.constant 0 : index
      %c2 = arith.constant 2 : index
      %c0_45 = arith.constant 0 : index
      %c0_46 = arith.constant 0 : index
      %62 = vector.load %arg4[%c0_44, %c2, %c0_45, %c0_46] : memref<1x4x8x128xf32, #tpu.memory_space<vmem>>, vector<1x1x8x128xf32>
      %63 = vector.shape_cast %62 : vector<1x1x8x128xf32> to vector<8x128xf32>
      %64 = vector.shape_cast %61 : vector<8x128xf32> to vector<1x1x8x128xf32>
      tpu.vector_store %arg4[%c0_44, %c2, %c0_45, %c0_46], %64 {strides = array<i32>} : memref<1x4x8x128xf32, #tpu.memory_space<vmem>>, vector<1x1x8x128xf32>,
      %c0_47 = arith.constant 0 : index
      %c0_48 = arith.constant 0 : index
      %65 = vector.load %arg8[%c0_47, %c0_48] : memref<1x512xf32, #tpu.memory_space<vmem>>, vector<1x512xf32>
      %66 = vector.shape_cast %65 : vector<1x512xf32> to vector<1x1x512xf32>
      %cst_49 = arith.constant dense<0.000000e+00> : vector<1xf32>
      %67 = vector.multi_reduction <add>, %66, %cst_49 [1, 2] : vector<1x1x512xf32> to vector<1xf32>
      %68 = vector.shape_cast %67 : vector<1xf32> to vector<1x1x1xf32>
      %69 = vector.extract %68[0, 0, 0] : f32 from vector<1x1x1xf32>
      %70 = vector.broadcast %69 : f32 to vector<8x128xf32>
      %c0_50 = arith.constant 0 : index
      %c3 = arith.constant 3 : index
      %c0_51 = arith.constant 0 : index
      %c0_52 = arith.constant 0 : index
      %71 = vector.load %arg4[%c0_50, %c3, %c0_51, %c0_52] : memref<1x4x8x128xf32, #tpu.memory_space<vmem>>, vector<1x1x8x128xf32>
      %72 = vector.shape_cast %71 : vector<1x1x8x128xf32> to vector<8x128xf32>
      %73 = vector.shape_cast %70 : vector<8x128xf32> to vector<1x1x8x128xf32>
      tpu.vector_store %arg4[%c0_50, %c3, %c0_51, %c0_52], %73 {strides = array<i32>} : memref<1x4x8x128xf32, #tpu.memory_space<vmem>>, vector<1x1x8x128xf32>,
    } else {
    }
    return
  }
  func.func @transform_0(%arg0: i32, %arg1: i32) -> (i32, i32) {
    %c1_i32 = arith.constant 1 : i32
    %0 = arith.muli %arg0, %c1_i32 : i32
    %1 = arith.addi %0, %arg1 : i32
    %c0_i32 = arith.constant 0 : i32
    %2 = arith.minsi %1, %c0_i32 : i32
    %c0_i32_0 = arith.constant 0 : i32
    %c0_i32_1 = arith.constant 0 : i32
    return %2, %c0_i32_0 : i32, i32
  }
  func.func @transform_1(%arg0: i32, %arg1: i32) -> (i32, i32) {
    %c1_i32 = arith.constant 1 : i32
    %0 = arith.muli %arg0, %c1_i32 : i32
    %1 = arith.addi %0, %arg1 : i32
    %c0_i32 = arith.constant 0 : i32
    %2 = arith.minsi %1, %c0_i32 : i32
    %c0_i32_0 = arith.constant 0 : i32
    %c0_i32_1 = arith.constant 0 : i32
    return %2, %c0_i32_0 : i32, i32
  }
  func.func @transform_2(%arg0: i32, %arg1: i32) -> (i32, i32, i32, i32) {
    %c0_i32 = arith.constant 0 : i32
    %c0_i32_0 = arith.constant 0 : i32
    %c0_i32_1 = arith.constant 0 : i32
    %c0_i32_2 = arith.constant 0 : i32
    return %arg0, %c0_i32, %c0_i32_0, %c0_i32_1 : i32, i32, i32, i32
  }
}

</mosaic_0001>

<bundles_post_ra>
// kernel: tpu_custom_call.1
= control target key start
LH: loop header
LB: loop body
LE: loop exit
PB: predicated region body
PF: predicated region fallthrough
CT: control target
= control target key end

     0   :  { %7 = vsyncpa [#allocation7], 0  ;;  %s401_s0 = inlined_call_operand.hbm [shape: f32[1,512], index: 0, kind: input, shape index: {}]   ;;  %s402_s1 = inlined_call_operand.hbm [shape: f32[1,512], index: 1, kind: input, shape index: {}]   ;;  %s403_s2 = inlined_call_operand.hbm [shape: f32[1,4,8,128], index: 2, kind: output, shape index: {}]  }
   0x1   :  { %8 = vsyncpa [#allocation10], 0 }
   0x2   :  { %9 = vsyncpa [#allocation8], 0  ;;  %s20_s11 = sshll.u32 %s401_s0, 4  ;;  %s335_s12 = smov [#allocation6]   ;;  %s21_s11 = int_to_ptr.hbm [resolvable:$true] %s20_s11 }
   0x3   :  { %s22_s13 = sshll.u32 %s335_s12, 4  ;;  %s36_s16 = sshll.u32 %s402_s1, 4  ;;  %s23_s13 = int_to_ptr.vmem [resolvable:$true] %s22_s13  ;;  %s37_s16 = int_to_ptr.hbm [resolvable:$true] %s36_s16 }
   0x4   :  { %25 = dma.hbm_to_vmem [thread:$0]  %s21_s11, 64, %s23_s13, [#allocation7]  }
   0x5   :  { %s336_s17 = smov [#allocation9]  }
   0x6   :  { %s38_s18 = sshll.u32 %s336_s17, 4  ;;  %s39_s18 = int_to_ptr.vmem [resolvable:$true] %s38_s18 }
   0x7   :  { %41 = dma.hbm_to_vmem [thread:$0]  %s37_s16, 64, %s39_s18, [#allocation10]  }
   0x8   :  { %329 = dma.done.wait [#allocation7], 64  }
   0x9   :  { %330 = vsyncadd [#allocation7], 4294967232 }
   0xa   :  { %331 = dma.done.wait [#allocation10], 64  }
   0xb   :  { %332 = vsyncadd [#allocation10], 4294967232  ;;  %v60_v0 = vlaneseq  ;;  %v337_v2 = vmov 0.0   ;;  %v68_v3 = vld [vmem:[#allocation6] sm:$0xf]  ;;  %vm110_vm3 = vcmask 1040384  }
   0xc   :  { %v69_v4 = vld [vmem:[#allocation9] sm:$0xf]  ;;  %v73_v5 = vsub.f32 1.0, %v68_v3  ;;  %v241_v6 = vadd.f32 -0.2, %v68_v3  ;;  %s338_s1 = smov [#allocation11]  }
   0xd   :  { %vm362_vm0 = vcmp.lt.s32.totalorder %v60_v0, 512  ;;  %vm70_vm1 = vcmp.gt.f32.partialorder %v69_v4, 0.0  ;;  %vm71_vm2 = vcmp.eq.f32.partialorder %v69_v4, 0.0  ;;  %s220_s19 = sshll.u32 %s338_s1, 4  ;;  %s222_s22 = sshll.u32 %s403_s2, 4  ;;  %s221_s19 = int_to_ptr.vmem [resolvable:$true] %s220_s19  ;;  %s223_s22 = int_to_ptr.hbm [resolvable:$true] %s222_s22 }
   0xe   :  { %64 = vst.msk [vmem:[#allocation2] sm:$0xf] %vm362_vm0, %v337_v2  ;;  %v240_v7 = vsel %vm70_vm1, 1.0, %v337_v2  ;;  %v74_v9 = vsel %vm70_vm1, %v73_v5, 0.0  ;;  %v88_v10 = vmax.f32 %v241_v6, 0.0  ;;  %v242_v13 = vsel %vm71_vm2, 1.0, %v337_v2 }
   0xf   :  { %65 = vst.msk [vmem:[#allocation3] sm:$0xf] %vm362_vm0, %v337_v2  ;;  %s339_s26 = smov 128   ;;  %s340_s27 = smov 8  }
  0x10   :  { %66 = vst.msk [vmem:[#allocation4] sm:$0xf] %vm362_vm0, %v337_v2  ;;  %v89_v15 = vsel %vm71_vm2, %v88_v10, 0.0 }
  0x11   :  { %67 = vst.msk [vmem:[#allocation5] sm:$0xf] %vm362_vm0, %v337_v2 }
  0x15   :  { %v72_v8 = vld [vmem:[#allocation2] sm:$0xf] }
  0x16   :  { %v75_v11 = vadd.f32 %v74_v9, %v72_v8  ;;  %v81_v12 = vld [vmem:[#allocation3] sm:$0xf] }
  0x17   :  { %v86_v14 = vld [vmem:[#allocation4] sm:$0xf]  ;;  %v84_v16 = vadd.f32 %v240_v7, %v81_v12 }
  0x18   :  { %80 = vst.msk [vmem:[#allocation2] sm:$0xf] %vm362_vm0, %v75_v11  ;;  %v90_v17 = vadd.f32 %v89_v15, %v86_v14  ;;  %v92_v18 = vld [vmem:[#allocation5] sm:$0xf] }
  0x19   :  { %85 = vst.msk [vmem:[#allocation3] sm:$0xf] %vm362_vm0, %v84_v16  ;;  %v95_v19 = vadd.f32 %v242_v13, %v92_v18 }
  0x1a   :  { %91 = vst.msk [vmem:[#allocation4] sm:$0xf] %vm362_vm0, %v90_v17 }
  0x1b   :  { %96 = vst.msk [vmem:[#allocation5] sm:$0xf] %vm362_vm0, %v95_v19 }
  0x1f   :  { %v100_v20 = vld [vmem:[#allocation2] sm:$0xf] }
  0x20   :  { %v102_v21 = vperm.slane %v100_v20, 0  ;;  %v103_v22 = vperm.slane %v100_v20, 1  ;;  %v104_v23 = vperm.slane %v100_v20, 2  ;;  %v105_v24 = vperm.slane %v100_v20, 3  ;;  %v129_v25 = vld [vmem:[#allocation3] sm:$0xf] }
  0x21   :  { %v158_v26 = vld [vmem:[#allocation4] sm:$0xf]  ;;  %v131_v27 = vperm.slane %v129_v25, 0  ;;  %v132_v28 = vperm.slane %v129_v25, 1  ;;  %v133_v29 = vperm.slane %v129_v25, 2  ;;  %v134_v49 = vperm.slane %v129_v25, 3 }
  0x22   :  { %v111_v30 = vsel %vm110_vm3, %v102_v21, 0.0  ;;  %v112_v31 = vsel %vm110_vm3, %v103_v22, 0.0  ;;  %v114_v32 = vsel %vm110_vm3, %v104_v23, 0.0  ;;  %v116_v33 = vsel %vm110_vm3, %v105_v24, 0.0  ;;  %v187_v42 = vld [vmem:[#allocation5] sm:$0xf] }
  0x23   :  { %v113_v34 = vadd.f32 %v112_v31, %v111_v30  ;;  %v160_v35 = vperm.slane %v158_v26, 0  ;;  %v161_v36 = vperm.slane %v158_v26, 1  ;;  %v162_v37 = vperm.slane %v158_v26, 2 }
  0x24   :  { %v163_v38 = vperm.slane %v158_v26, 3  ;;  %v139_v39 = vsel %vm110_vm3, %v131_v27, 0.0  ;;  %v140_v40 = vsel %vm110_vm3, %v132_v28, 0.0  ;;  %v142_v41 = vsel %vm110_vm3, %v133_v29, 0.0 }
  0x25   :  { %v115_v43 = vadd.f32 %v114_v32, %v113_v34  ;;  %v168_v44 = vsel %vm110_vm3, %v160_v35, 0.0  ;;  %v169_v45 = vsel %vm110_vm3, %v161_v36, 0.0  ;;  %v171_v46 = vsel %vm110_vm3, %v162_v37, 0.0 }
  0x26   :  { %v170_v47 = vadd.f32 %v169_v45, %v168_v44  ;;  %v173_v48 = vsel %vm110_vm3, %v163_v38, 0.0  ;;  %v141_v50 = vadd.f32 %v140_v40, %v139_v39  ;;  %v189_v52 = vperm.slane %v187_v42, 0 }
  0x27   :  { %v117_v51 = vadd.f32 %v116_v33, %v115_v43  ;;  %v190_v53 = vperm.slane %v187_v42, 1  ;;  %v191_v54 = vperm.slane %v187_v42, 2  ;;  %v192_v57 = vperm.slane %v187_v42, 3 }
  0x28   :  { %v172_v55 = vadd.f32 %v171_v46, %v170_v47  ;;  %v143_v56 = vadd.f32 %v142_v41, %v141_v50  ;;  %v197_v58 = vsel %vm110_vm3, %v189_v52, 0.0  ;;  %v144_v62 = vsel %vm110_vm3, %v134_v49, 0.0 }
  0x29   :  { %118 = vadd.xlane.f32.xlu0 %v117_v51  ;;  %v198_v59 = vsel %vm110_vm3, %v190_v53, 0.0  ;;  %v200_v60 = vsel %vm110_vm3, %v191_v54, 0.0  ;;  %v202_v2 = vsel %vm110_vm3, %v192_v57, 0.0 }
  0x2a   :  { %v174_v61 = vadd.f32 %v173_v48, %v172_v55  ;;  %v199_v63 = vadd.f32 %v198_v59, %v197_v58  ;;  %v145_v1 = vadd.f32 %v144_v62, %v143_v56 }
  0x2c   :  { %175 = vadd.xlane.f32.xlu1 %v174_v61  ;;  %v201_v0 = vadd.f32 %v200_v60, %v199_v63 }
  0x2e   :  { %v203_v3 = vadd.f32 %v202_v2, %v201_v0 }
  0x31   :  { %146 = vadd.xlane.f32.xlu0 %v145_v1 }
  0x34   :  { %204 = vadd.xlane.f32.xlu1 %v203_v3 }
  0x9c   :  { %v119_v4 = vpop.xlane.xlu0 %118 }
  0x9d   :  { %v120_v5 = vrot.slane %v119_v4, 4 }
  0x9f   :  { %v121_v6 = vadd.f32 %v120_v5, %v119_v4  ;;  %v176_v7 = vpop.xlane.xlu1 %175 }
  0xa0   :  { %v177_v8 = vrot.slane %v176_v7, 4 }
  0xa1   :  { %v122_v9 = vrot.slane %v121_v6, 2 }
  0xa2   :  { %v178_v10 = vadd.f32 %v177_v8, %v176_v7 }
  0xa3   :  { %v123_v11 = vadd.f32 %v122_v9, %v121_v6 }
  0xa4   :  { %v179_v12 = vrot.slane %v178_v10, 2  ;;  %v147_v13 = vpop.xlane.xlu0 %146 }
  0xa5   :  { %v148_v14 = vrot.slane %v147_v13, 4  ;;  %v124_v15 = vrot.slane %v123_v11, 1 }
  0xa6   :  { %v180_v20 = vadd.f32 %v179_v12, %v178_v10 }
  0xa7   :  { %v149_v16 = vadd.f32 %v148_v14, %v147_v13  ;;  %v205_v17 = vpop.xlane.xlu1 %204  ;;  %v125_v18 = vadd.f32 %v124_v15, %v123_v11 }
  0xa8   :  { %v206_v19 = vrot.slane %v205_v17, 4  ;;  %v181_v25 = vrot.slane %v180_v20, 1 }
  0xa9   :  { %v150_v21 = vrot.slane %v149_v16, 2  ;;  %243 = vpush %v125_v18 }
  0xaa   :  { %v207_v22 = vadd.f32 %v206_v19, %v205_v17  ;;  %v182_v29 = vadd.f32 %v181_v25, %v180_v20 }
  0xab   :  { %v151_v23 = vadd.f32 %v150_v21, %v149_v16 }
  0xac   :  { %v208_v24 = vrot.slane %v207_v22, 2 }
  0xad   :  { %v152_v26 = vrot.slane %v151_v23, 1 }
  0xae   :  { %v209_v27 = vadd.f32 %v208_v24, %v207_v22 }
  0xaf   :  { %v153_v28 = vadd.f32 %v152_v26, %v151_v23 }
  0xb0   :  { %v210_v30 = vrot.slane %v209_v27, 1 }
  0xb1   :  { %245 = vpush %v153_v28 }
  0xb2   :  { %247 = vpush %v182_v29  ;;  %v211_v31 = vadd.f32 %v210_v30, %v209_v27 }
  0xb4   :  { %249 = vpush %v211_v31 }
  0xda   :  { %s244_s0 = spop %243 }
  0xdb   :  { %v127_v32 = vstv %s244_s0 }
  0xdc   :  { %128 = vst [vmem:[#allocation11] sm:$0xff] %v127_v32 }
  0xe2   :  { %s246_s23 = spop %245 }
  0xe3   :  { %v155_v33 = vstv %s246_s23  ;;  %s248_s24 = spop %247 }
  0xe4   :  { %157 = vst [vmem:[#allocation11 + $0x8] sm:$0xff] %v155_v33  ;;  %v184_v34 = vstv %s248_s24 }
  0xe5   :  { %186 = vst [vmem:[#allocation11 + $0x10] sm:$0xff] %v184_v34  ;;  %s250_s25 = spop %249 }
  0xe6   :  { %v213_v35 = vstv %s250_s25 }
  0xe7   :  { %215 = vst [vmem:[#allocation11 + $0x18] sm:$0xff] %v213_v35 }
  0xe8   :  { %228 = dma.vmem_to_hbm [thread:$0]  %s221_s19, 512, %s223_s22, [#allocation8], %s339_s26, %s339_s26, %s340_s27  }
  0xe9   :  { %333 = dma.done.wait [#allocation8], 512  }
  0xea   :  { %334 = vsyncadd [#allocation8], 4294966784 }
  0xeb   :  { %233 = vsyncpa [#allocation7], 1 }
  0xec   :  { %234 = vsyncpa [#allocation10], 1 }
  0xed   :  { %235 = vsyncpa [#allocation8], 1 }

</bundles_post_ra>
